<compile_context>
chip_gen: v6e
topology: v6e:2x2x1
jax: 0.10.0
libtpu: 0.0.40
codegen_flags: <defaults>
</compile_context>

<pallas_src>
import jax
import jax.numpy as jnp
from jax.experimental import pallas as pl
from jax.experimental.pallas import tpu as pltpu


def _make_fused_kernel(n, in_f, out_f):
    """Builds a kernel computing relu(x @ W + b) and storing it lane-dense.

    x_ref  : (n, in_f)        f32
    wb_ref : (in_f + 1, out_f) f32   -- rows [0, in_f) are W, row in_f is b
    o_ref  : (1, n * out_f)   f32   -- row i of y lands in lanes [i*out_f, (i+1)*out_f)
    """

    def kernel(x_ref, wb_ref, o_ref):
        x = x_ref[...]                                    # (n, in_f)
        b = wb_ref[in_f:in_f + 1, :]                      # (1, out_f) bias row
        # Unrolled VPU multiply-accumulate (avoids MXU for a tiny GEMM).
        y = jnp.broadcast_to(b, (n, out_f))               # start from bias
        for k in range(in_f):
            y = y + x[:, k:k + 1] * wb_ref[k:k + 1, :]    # (n,1)*(1,out_f) FMA
        y = jnp.maximum(y, 0.0)                           # ReLU, (n, out_f)
        # Lane-dense store: row i -> lanes [i*out_f, (i+1)*out_f) of the output.
        for i in range(n):
            o_ref[:, i * out_f:(i + 1) * out_f] = y[i:i + 1, :]

    return kernel


def fused_linear_relu_concat(x, wb):
    """relu(x @ W + b) flattened row-major to shape (1, N*OUT), single Pallas call.

    `wb` packs the weight (IN, OUT) and bias (1, OUT) as a single (IN+1, OUT) array.
    """
    n, in_f = x.shape
    out_f = wb.shape[1]
    kernel = _make_fused_kernel(n, in_f, out_f)

    bytes_accessed = 4 * (x.size + wb.size + n * out_f)
    return pl.pallas_call(
        kernel,
        out_shape=jax.ShapeDtypeStruct((1, n * out_f), jnp.float32),
        in_specs=[
            pl.BlockSpec(x.shape, lambda: (0, 0),
                         memory_space=pltpu.MemorySpace.VMEM),
            pl.BlockSpec(wb.shape, lambda: (0, 0),
                         memory_space=pltpu.MemorySpace.VMEM),
        ],
        out_specs=pl.BlockSpec((1, n * out_f), lambda: (0, 0),
                               memory_space=pltpu.MemorySpace.VMEM),
        cost_estimate=pl.CostEstimate(
            flops=2 * n * in_f * out_f,
            transcendentals=0,
            bytes_accessed=bytes_accessed,
        ),
        compiler_params=pltpu.CompilerParams(vmem_limit_bytes=1 << 20),
    )(x, wb)


def model_forward(x1, wb):
    """Reproduces Model.forward semantics.

    Returns (concatenated tensor of shape (1, N*OUT),
             tuple of N tensors of shape (1, OUT)).
    """
    n = x1.shape[0]
    out_f = wb.shape[1]
    concat = fused_linear_relu_concat(x1, wb)              # (1, n*out_f)
    # torch.split(y, [1]*n, dim=0)[i] == concat[:, i*out_f:(i+1)*out_f]
    splits = tuple(concat[:, i * out_f:(i + 1) * out_f] for i in range(n))
    return concat, splits


if __name__ == "__main__":
    key = jax.random.PRNGKey(0)
    k_x, k_w, k_b = jax.random.split(key, 3)

    N, IN, OUT = 5, 10, 32

    # Input (matches x1 = torch.randn(5, 10))
    x1 = jax.random.normal(k_x, (N, IN), dtype=jnp.float32)

    # Deterministic Linear(10, 32) params (PyTorch-style uniform(-1/sqrt(in), 1/sqrt(in)))
    bound = 1.0 / (IN ** 0.5)
    w = jax.random.uniform(k_w, (IN, OUT), dtype=jnp.float32, minval=-bound, maxval=bound)
    b = jax.random.uniform(k_b, (1, OUT), dtype=jnp.float32, minval=-bound, maxval=bound)

    # Fold bias into the weight operand once, outside the kernel.
    wb = jnp.concatenate([w, b], axis=0)                   # (IN + 1, OUT)

    fwd = jax.jit(model_forward)
    concat, splits = fwd(x1, wb)
    concat = jax.block_until_ready(concat)
    splits = jax.block_until_ready(splits)

    # Sanity checks against a pure-JAX reference.
    y_ref = jnp.maximum(x1 @ w + b, 0.0)
    assert concat.shape == (1, N * OUT)
    assert len(splits) == N and all(s.shape == (1, OUT) for s in splits)
    assert jnp.allclose(concat, y_ref.reshape(1, N * OUT), atol=1e-5)
    assert all(jnp.allclose(splits[i], y_ref[i:i + 1], atol=1e-5) for i in range(N))

    print("KERNEL_OK")
</pallas_src>

<mosaic_0001>
module attributes {stable_mosaic.version = 11 : i64} {
  func.func @kernel(%arg0: memref<5x10xf32, #tpu.memory_space<vmem>>, %arg1: memref<11x32xf32, #tpu.memory_space<vmem>>, %arg2: memref<1x160xf32, #tpu.memory_space<vmem>>) attributes {dimension_semantics = [], scalar_prefetch = 0 : i64, scratch_operands = 0 : i64, tpu.core_type = #tpu.core_type<tc>} {
    %c0 = arith.constant 0 : index
    %c0_0 = arith.constant 0 : index
    %0 = vector.load %arg0[%c0, %c0_0] : memref<5x10xf32, #tpu.memory_space<vmem>>, vector<5x10xf32>
    %c10 = arith.constant 10 : index
    %c0_1 = arith.constant 0 : index
    %1 = vector.load %arg1[%c10, %c0_1] : memref<11x32xf32, #tpu.memory_space<vmem>>, vector<1x32xf32>
    %2 = vector.shape_cast %1 : vector<1x32xf32> to vector<1x32xf32>
    %3 = vector.broadcast %2 : vector<1x32xf32> to vector<5x32xf32>
    %4 = vector.extract_strided_slice %0 {offsets = [0, 0], sizes = [5, 1], strides = [1, 1]} : vector<5x10xf32> to vector<5x1xf32>
    %c0_2 = arith.constant 0 : index
    %c0_3 = arith.constant 0 : index
    %5 = vector.load %arg1[%c0_2, %c0_3] : memref<11x32xf32, #tpu.memory_space<vmem>>, vector<1x32xf32>
    %6 = vector.broadcast %4 : vector<5x1xf32> to vector<5x32xf32>
    %7 = vector.broadcast %5 : vector<1x32xf32> to vector<5x32xf32>
    %8 = arith.mulf %6, %7 : vector<5x32xf32>
    %9 = arith.addf %3, %8 : vector<5x32xf32>
    %10 = vector.extract_strided_slice %0 {offsets = [0, 1], sizes = [5, 1], strides = [1, 1]} : vector<5x10xf32> to vector<5x1xf32>
    %c1 = arith.constant 1 : index
    %c0_4 = arith.constant 0 : index
    %11 = vector.load %arg1[%c1, %c0_4] : memref<11x32xf32, #tpu.memory_space<vmem>>, vector<1x32xf32>
    %12 = vector.broadcast %10 : vector<5x1xf32> to vector<5x32xf32>
    %13 = vector.broadcast %11 : vector<1x32xf32> to vector<5x32xf32>
    %14 = arith.mulf %12, %13 : vector<5x32xf32>
    %15 = arith.addf %9, %14 : vector<5x32xf32>
    %16 = vector.extract_strided_slice %0 {offsets = [0, 2], sizes = [5, 1], strides = [1, 1]} : vector<5x10xf32> to vector<5x1xf32>
    %c2 = arith.constant 2 : index
    %c0_5 = arith.constant 0 : index
    %17 = vector.load %arg1[%c2, %c0_5] : memref<11x32xf32, #tpu.memory_space<vmem>>, vector<1x32xf32>
    %18 = vector.broadcast %16 : vector<5x1xf32> to vector<5x32xf32>
    %19 = vector.broadcast %17 : vector<1x32xf32> to vector<5x32xf32>
    %20 = arith.mulf %18, %19 : vector<5x32xf32>
    %21 = arith.addf %15, %20 : vector<5x32xf32>
    %22 = vector.extract_strided_slice %0 {offsets = [0, 3], sizes = [5, 1], strides = [1, 1]} : vector<5x10xf32> to vector<5x1xf32>
    %c3 = arith.constant 3 : index
    %c0_6 = arith.constant 0 : index
    %23 = vector.load %arg1[%c3, %c0_6] : memref<11x32xf32, #tpu.memory_space<vmem>>, vector<1x32xf32>
    %24 = vector.broadcast %22 : vector<5x1xf32> to vector<5x32xf32>
    %25 = vector.broadcast %23 : vector<1x32xf32> to vector<5x32xf32>
    %26 = arith.mulf %24, %25 : vector<5x32xf32>
    %27 = arith.addf %21, %26 : vector<5x32xf32>
    %28 = vector.extract_strided_slice %0 {offsets = [0, 4], sizes = [5, 1], strides = [1, 1]} : vector<5x10xf32> to vector<5x1xf32>
    %c4 = arith.constant 4 : index
    %c0_7 = arith.constant 0 : index
    %29 = vector.load %arg1[%c4, %c0_7] : memref<11x32xf32, #tpu.memory_space<vmem>>, vector<1x32xf32>
    %30 = vector.broadcast %28 : vector<5x1xf32> to vector<5x32xf32>
    %31 = vector.broadcast %29 : vector<1x32xf32> to vector<5x32xf32>
    %32 = arith.mulf %30, %31 : vector<5x32xf32>
    %33 = arith.addf %27, %32 : vector<5x32xf32>
    %34 = vector.extract_strided_slice %0 {offsets = [0, 5], sizes = [5, 1], strides = [1, 1]} : vector<5x10xf32> to vector<5x1xf32>
    %c5 = arith.constant 5 : index
    %c0_8 = arith.constant 0 : index
    %35 = vector.load %arg1[%c5, %c0_8] : memref<11x32xf32, #tpu.memory_space<vmem>>, vector<1x32xf32>
    %36 = vector.broadcast %34 : vector<5x1xf32> to vector<5x32xf32>
    %37 = vector.broadcast %35 : vector<1x32xf32> to vector<5x32xf32>
    %38 = arith.mulf %36, %37 : vector<5x32xf32>
    %39 = arith.addf %33, %38 : vector<5x32xf32>
    %40 = vector.extract_strided_slice %0 {offsets = [0, 6], sizes = [5, 1], strides = [1, 1]} : vector<5x10xf32> to vector<5x1xf32>
    %c6 = arith.constant 6 : index
    %c0_9 = arith.constant 0 : index
    %41 = vector.load %arg1[%c6, %c0_9] : memref<11x32xf32, #tpu.memory_space<vmem>>, vector<1x32xf32>
    %42 = vector.broadcast %40 : vector<5x1xf32> to vector<5x32xf32>
    %43 = vector.broadcast %41 : vector<1x32xf32> to vector<5x32xf32>
    %44 = arith.mulf %42, %43 : vector<5x32xf32>
    %45 = arith.addf %39, %44 : vector<5x32xf32>
    %46 = vector.extract_strided_slice %0 {offsets = [0, 7], sizes = [5, 1], strides = [1, 1]} : vector<5x10xf32> to vector<5x1xf32>
    %c7 = arith.constant 7 : index
    %c0_10 = arith.constant 0 : index
    %47 = vector.load %arg1[%c7, %c0_10] : memref<11x32xf32, #tpu.memory_space<vmem>>, vector<1x32xf32>
    %48 = vector.broadcast %46 : vector<5x1xf32> to vector<5x32xf32>
    %49 = vector.broadcast %47 : vector<1x32xf32> to vector<5x32xf32>
    %50 = arith.mulf %48, %49 : vector<5x32xf32>
    %51 = arith.addf %45, %50 : vector<5x32xf32>
    %52 = vector.extract_strided_slice %0 {offsets = [0, 8], sizes = [5, 1], strides = [1, 1]} : vector<5x10xf32> to vector<5x1xf32>
    %c8 = arith.constant 8 : index
    %c0_11 = arith.constant 0 : index
    %53 = vector.load %arg1[%c8, %c0_11] : memref<11x32xf32, #tpu.memory_space<vmem>>, vector<1x32xf32>
    %54 = vector.broadcast %52 : vector<5x1xf32> to vector<5x32xf32>
    %55 = vector.broadcast %53 : vector<1x32xf32> to vector<5x32xf32>
    %56 = arith.mulf %54, %55 : vector<5x32xf32>
    %57 = arith.addf %51, %56 : vector<5x32xf32>
    %58 = vector.extract_strided_slice %0 {offsets = [0, 9], sizes = [5, 1], strides = [1, 1]} : vector<5x10xf32> to vector<5x1xf32>
    %c9 = arith.constant 9 : index
    %c0_12 = arith.constant 0 : index
    %59 = vector.load %arg1[%c9, %c0_12] : memref<11x32xf32, #tpu.memory_space<vmem>>, vector<1x32xf32>
    %60 = vector.broadcast %58 : vector<5x1xf32> to vector<5x32xf32>
    %61 = vector.broadcast %59 : vector<1x32xf32> to vector<5x32xf32>
    %62 = arith.mulf %60, %61 : vector<5x32xf32>
    %63 = arith.addf %57, %62 : vector<5x32xf32>
    %cst = arith.constant 0.000000e+00 : f32
    %64 = vector.broadcast %cst : f32 to vector<5x32xf32>
    %65 = arith.maximumf %63, %64 : vector<5x32xf32>
    %66 = vector.extract_strided_slice %65 {offsets = [0, 0], sizes = [1, 32], strides = [1, 1]} : vector<5x32xf32> to vector<1x32xf32>
    %c0_13 = arith.constant 0 : index
    %c0_14 = arith.constant 0 : index
    %67 = vector.load %arg2[%c0_13, %c0_14] : memref<1x160xf32, #tpu.memory_space<vmem>>, vector<1x32xf32>
    tpu.vector_store %arg2[%c0_13, %c0_14], %66 {strides = array<i32>} : memref<1x160xf32, #tpu.memory_space<vmem>>, vector<1x32xf32>,
    %68 = vector.extract_strided_slice %65 {offsets = [1, 0], sizes = [1, 32], strides = [1, 1]} : vector<5x32xf32> to vector<1x32xf32>
    %c0_15 = arith.constant 0 : index
    %c32 = arith.constant 32 : index
    %69 = vector.load %arg2[%c0_15, %c32] : memref<1x160xf32, #tpu.memory_space<vmem>>, vector<1x32xf32>
    tpu.vector_store %arg2[%c0_15, %c32], %68 {strides = array<i32>} : memref<1x160xf32, #tpu.memory_space<vmem>>, vector<1x32xf32>,
    %70 = vector.extract_strided_slice %65 {offsets = [2, 0], sizes = [1, 32], strides = [1, 1]} : vector<5x32xf32> to vector<1x32xf32>
    %c0_16 = arith.constant 0 : index
    %c64 = arith.constant 64 : index
    %71 = vector.load %arg2[%c0_16, %c64] : memref<1x160xf32, #tpu.memory_space<vmem>>, vector<1x32xf32>
    tpu.vector_store %arg2[%c0_16, %c64], %70 {strides = array<i32>} : memref<1x160xf32, #tpu.memory_space<vmem>>, vector<1x32xf32>,
    %72 = vector.extract_strided_slice %65 {offsets = [3, 0], sizes = [1, 32], strides = [1, 1]} : vector<5x32xf32> to vector<1x32xf32>
    %c0_17 = arith.constant 0 : index
    %c96 = arith.constant 96 : index
    %73 = vector.load %arg2[%c0_17, %c96] : memref<1x160xf32, #tpu.memory_space<vmem>>, vector<1x32xf32>
    tpu.vector_store %arg2[%c0_17, %c96], %72 {strides = array<i32>} : memref<1x160xf32, #tpu.memory_space<vmem>>, vector<1x32xf32>,
    %74 = vector.extract_strided_slice %65 {offsets = [4, 0], sizes = [1, 32], strides = [1, 1]} : vector<5x32xf32> to vector<1x32xf32>
    %c0_18 = arith.constant 0 : index
    %c128 = arith.constant 128 : index
    %75 = vector.load %arg2[%c0_18, %c128] : memref<1x160xf32, #tpu.memory_space<vmem>>, vector<1x32xf32>
    tpu.vector_store %arg2[%c0_18, %c128], %74 {strides = array<i32>} : memref<1x160xf32, #tpu.memory_space<vmem>>, vector<1x32xf32>,
    return
  }
}

</mosaic_0001>

<bundles_post_ra>
// kernel: model_forward.1
= control target key start
LH: loop header
LB: loop body
LE: loop exit
PB: predicated region body
PF: predicated region fallthrough
CT: control target
= control target key end

     0   :  { %7 = vsyncpa [#allocation3], 0  ;;  %s367_s0 = inlined_call_operand.hbm [shape: f32[5,10], index: 0, kind: input, shape index: {}]   ;;  %s368_s1 = inlined_call_operand.hbm [shape: f32[11,32], index: 1, kind: input, shape index: {}]   ;;  %s369_s2 = inlined_call_operand.vmem [shape: f32[1,160], index: 2, kind: output, shape index: {}]  }
   0x1   :  { %8 = vsyncpa [#allocation5], 0  ;;  %s313_s9 = smov [#allocation2]   ;;  %s314_s11 = smov [#allocation4]  }
   0x2   :  { %s15_s10 = sshll.u32 %s313_s9, 4  ;;  %s24_s12 = sshll.u32 %s314_s11, 4  ;;  %s16_s10 = int_to_ptr.vmem [resolvable:$true] %s15_s10  ;;  %s25_s12 = int_to_ptr.vmem [resolvable:$true] %s24_s12 }
   0x3   :  { %s277_s13 = scalar_lea.vmem %s16_s10, 128  ;;  %p282_p1 = scmp.lt.s32.totalorder %s16_s10, %s16_s10 }
   0x4   :  { %p278_p0 = scmp.ne.s32.totalorder %s16_s10, %s277_s13  ;;  %p283_p2 = scmp.lt.s32.totalorder %s277_s13, %s277_s13 }
   0x6   :  { %p284_p3 = por %p283_p2, %p282_p1 }
   0x8   :  { %p285_p4 = pnand %p284_p3, %p278_p0 }
   0xa   :  { %288 = shalt.err (!%p285_p4)
}
   0xb   :  { %18 = dma.hbm_to_vmem [thread:$0]  %s367_s0, 128, %s16_s10, [#allocation3]  }
   0xc   :  { %s297_s16 = scalar_lea.vmem %s25_s12, 256  ;;  %p302_p6 = scmp.lt.s32.totalorder %s25_s12, %s25_s12 }
   0xd   :  { %p298_p5 = scmp.ne.s32.totalorder %s25_s12, %s297_s16  ;;  %p303_p7 = scmp.lt.s32.totalorder %s297_s16, %s297_s16 }
   0xf   :  { %p304_p8 = por %p303_p7, %p302_p6 }
  0x11   :  { %p305_p9 = pnand %p304_p8, %p298_p5 }
  0x13   :  { %308 = shalt.err (!%p305_p9)
}
  0x14   :  { %s315_s17 = smov 128   ;;  %s316_s18 = smov 8  }
  0x15   :  { %30 = dma.hbm_to_vmem [thread:$0]  %s368_s1, 256, %s25_s12, [#allocation5], %s315_s17, %s315_s17, %s316_s18  }
  0x16   :  { %309 = dma.done.wait [#allocation3], 128  }
  0x17   :  { %310 = vsyncadd [#allocation3], 4294967168 }
  0x18   :  { %311 = dma.done.wait [#allocation5], 256  }
  0x19   :  { %312 = vsyncadd [#allocation5], 4294967040  ;;  %v317_v0 = vmov 2   ;;  %v318_v1 = vmov 0   ;;  %v37_v2 = vld [vmem:[#allocation2] sm:$0x1f]  ;;  %v155_v43 = vlaneseq }
  0x1a   :  { %260 = vset.pattern.permute.xlu1 %v317_v0  ;;  %258 = vset.pattern.permute.xlu0 %v318_v1  ;;  %v319_v3 = vmov 3   ;;  %v320_v4 = vmov 1   ;;  %v321_v5 = vmov 4   ;;  %v322_v6 = vmov 5   ;;  %v230_v11 = vld [vmem:[#allocation4] ss:$0 sm:$0xff] }
  0x1b   :  { %68 = vperm.xlu1 %260, %v37_v2   ;;  %46 = vperm.xlu0 %258, %v37_v2   ;;  %v323_v7 = vmov 6   ;;  %v324_v8 = vmov 8   ;;  %v325_v9 = vmov 7   ;;  %v326_v10 = vmov 9   ;;  %v229_v14 = vld [vmem:[#allocation4 + $0xa] ss:$0 sm:$0xff] }
  0x1c   :  { %v231_v16 = vld [vmem:[#allocation4 + $0x1] ss:$0 sm:$0xff]  ;;  %v232_v18 = vld [vmem:[#allocation4 + $0x2] ss:$0 sm:$0xff]  ;;  %v233_v22 = vld [vmem:[#allocation4 + $0x3] ss:$0 sm:$0xff] }
  0x1d   :  { %v234_v25 = vld [vmem:[#allocation4 + $0x4] ss:$0 sm:$0xff]  ;;  %v235_v29 = vld [vmem:[#allocation4 + $0x5] ss:$0 sm:$0xff]  ;;  %v236_v35 = vld [vmem:[#allocation4 + $0x6] ss:$0 sm:$0xff] }
  0x1e   :  { %v237_v39 = vld [vmem:[#allocation4 + $0x7] ss:$0 sm:$0xff]  ;;  %v238_v40 = vld [vmem:[#allocation4 + $0x8] ss:$0 sm:$0xff]  ;;  %v327_v44 = vmov 1966171168  }
  0x1f   :  { %261 = vset.pattern.permute.xlu1 %v319_v3  ;;  %259 = vset.pattern.permute.xlu0 %v320_v4  ;;  %v162_v45 = vunpack.c.l.s4 %v327_v44  ;;  %v239_v50 = vld [vmem:[#allocation4 + $0x9] ss:$0 sm:$0xff]  ;;  %v165_v52 = vshrl.u32 %v155_v43, 7  ;;  %vm157_vm0 = vcmp.lt.s32.totalorder %v155_v43, 32  ;;  %s328_s21 = smov 64   ;;  %s329_s22 = smov 32  }
  0x20   :  { %79 = vperm.xlu1 %261, %v37_v2   ;;  %57 = vperm.xlu0 %259, %v37_v2   ;;  %s330_s25 = smov 96   ;;  %vm186_vm1 = vcmp.ge.s32.totalorder %v155_v43, 32  ;;  %vm187_vm2 = vcmp.lt.s32.totalorder %v155_v43, 64  ;;  %vm194_vm3 = vcmp.ge.s32.totalorder %v155_v43, 64  ;;  %vm195_vm4 = vcmp.lt.s32.totalorder %v155_v43, 96 }
  0x21   :  { %v163_v51 = vunpack.c.0.s8 %v162_v45  ;;  %vm188_vm5 = vmand %vm186_vm1, %vm187_vm2  ;;  %vm202_vm7 = vcmp.ge.s32.totalorder %v155_v43, 96  ;;  %vm203_vm8 = vcmp.lt.s32.totalorder %v155_v43, 128 }
  0x22   :  { %vm196_vm6 = vmand %vm194_vm3, %vm195_vm4 }
  0x23   :  { %v166_v56 = vsub.s32 %v163_v51, %v165_v52  ;;  %vm204_vm9 = vmand %vm202_vm7, %vm203_vm8 }
  0x24   :  { %262 = vset.pattern.permute.xlu1 %v321_v5  ;;  %263 = vset.pattern.permute.xlu0 %v322_v6 }
  0x25   :  { %90 = vperm.xlu1 %262, %v37_v2   ;;  %101 = vperm.xlu0 %263, %v37_v2  }
  0x29   :  { %264 = vset.pattern.permute.xlu1 %v323_v7  ;;  %266 = vset.pattern.permute.xlu0 %v324_v8 }
  0x2a   :  { %112 = vperm.xlu1 %264, %v37_v2   ;;  %134 = vperm.xlu0 %266, %v37_v2  }
  0x2e   :  { %265 = vset.pattern.permute.xlu1 %v325_v9  ;;  %268 = vset.pattern.permute.xlu0 %v326_v10 }
  0x2f   :  { %123 = vperm.xlu1 %265, %v37_v2  }
  0x33   :  { %267 = vset.pattern.permute.xlu1 %v326_v10 }
  0x34   :  { %145 = vperm.xlu1 %267, %v37_v2  }
  0x96   :  { %v69_v12 = vpop.permute.xlu1 %68  ;;  %v47_v13 = vpop.permute.xlu0 %46 }
  0x97   :  { %v53_v15 = vmul.f32 %v230_v11, %v47_v13  ;;  %v75_v23 = vmul.f32 %v232_v18, %v69_v12 }
  0x99   :  { %v54_v17 = vadd.f32 %v229_v14, %v53_v15 }
  0x9b   :  { %v80_v19 = vpop.permute.xlu1 %79  ;;  %v58_v20 = vpop.permute.xlu0 %57 }
  0x9c   :  { %v64_v21 = vmul.f32 %v231_v16, %v58_v20  ;;  %v86_v26 = vmul.f32 %v233_v22, %v80_v19 }
  0x9e   :  { %v65_v24 = vadd.f32 %v64_v21, %v54_v17 }
  0xa0   :  { %v76_v27 = vadd.f32 %v75_v23, %v65_v24  ;;  %v91_v28 = vpop.permute.xlu1 %90  ;;  %v102_v30 = vpop.permute.xlu0 %101 }
  0xa1   :  { %v97_v31 = vmul.f32 %v234_v25, %v91_v28  ;;  %v108_v33 = vmul.f32 %v235_v29, %v102_v30 }
  0xa2   :  { %v87_v32 = vadd.f32 %v86_v26, %v76_v27 }
  0xa4   :  { %v98_v34 = vadd.f32 %v97_v31, %v87_v32 }
  0xa5   :  { %v113_v36 = vpop.permute.xlu1 %112  ;;  %v135_v41 = vpop.permute.xlu0 %134 }
  0xa6   :  { %v109_v37 = vadd.f32 %v108_v33, %v98_v34  ;;  %v119_v38 = vmul.f32 %v236_v35, %v113_v36  ;;  %v141_v48 = vmul.f32 %v238_v40, %v135_v41 }
  0xa8   :  { %v120_v46 = vadd.f32 %v119_v38, %v109_v37 }
  0xaa   :  { %v124_v42 = vpop.permute.xlu1 %123 }
  0xab   :  { %v130_v47 = vmul.f32 %v237_v39, %v124_v42 }
  0xad   :  { %v131_v49 = vadd.f32 %v130_v47, %v120_v46 }
  0xaf   :  { %v142_v53 = vadd.f32 %v141_v48, %v131_v49  ;;  %v146_v54 = vpop.permute.xlu1 %145 }
  0xb0   :  { %v152_v55 = vmul.f32 %v239_v50, %v146_v54 }
  0xb2   :  { %v153_v57 = vadd.f32 %v152_v55, %v142_v53 }
  0xb4   :  { %v154_v58 = vmax.f32 %v153_v57, 0.0 }
  0xb6   :  { %v206_v59 = vcombine.high %v154_v58, %v154_v58  ;;  %v167_v60 = vrot.slane %v154_v58, %v166_v56  ;;  %159 = vst.msk [vmem:[%s369_s2] sm:$0x1] %vm157_vm0, %v154_v58 }
  0xb8   :  { %v213_v61 = vrot.slane %v206_v59, %v166_v56  ;;  %v175_v62 = vrot.slane %v167_v60, %v166_v56  ;;  %v168_v63 = vcombine.high %v167_v60, %v167_v60 }
  0xba   :  { %v220_v0 = vrot.slane %v213_v61, %v166_v56  ;;  %v190_v1 = vcombine.high %v175_v62, %v175_v62  ;;  %v182_v2 = vrot.slane %v168_v63, %v166_v56 }
  0xbc   :  { %191 = vrot.lane.b32.xlu0 %v190_v1, %s328_s21  ;;  %183 = vrot.lane.b32.xlu1 %v182_v2, %s329_s22  ;;  %222 = vst.msk [vmem:[%s369_s2 + $0x1] sm:$0x1] %vm157_vm0, %v220_v0  ;;  %v198_v3 = vcombine.high %v182_v2, %v182_v2 }
  0xc0   :  { %199 = vrot.lane.b32.xlu1 %v198_v3, %s330_s25 }
 0x12e   :  { %v192_v4 = vpop.permute.xlu0 %191  ;;  %v184_v5 = vpop.permute.xlu1 %183 }
 0x12f   :  { %189 = vst.msk [vmem:[%s369_s2] sm:$0x1] %vm188_vm5, %v184_v5 }
 0x130   :  { %197 = vst.msk [vmem:[%s369_s2] sm:$0x1] %vm196_vm6, %v192_v4 }
 0x132   :  { %v200_v6 = vpop.permute.xlu1 %199 }
 0x133   :  { %205 = vst.msk [vmem:[%s369_s2] sm:$0x1] %vm204_vm9, %v200_v6 }
 0x134   :  { %227 = vsyncpa [#allocation3], 1 }
 0x135   :  { %228 = vsyncpa [#allocation5], 1 }

</bundles_post_ra>
